<compile_context>
chip_gen: v7x
topology: tpu7x:2x2x1
jax: 0.10.0
libtpu: 0.0.40
codegen_flags: <defaults>
</compile_context>

<pallas_src>
import functools

import jax
import jax.numpy as jnp
from jax.experimental import pallas as pl
from jax.experimental.pallas import tpu as pltpu


def _conv_stats_kernel(x_ref, w_ref, b_ref, y_ref, stats_ref, *, bb, L, C, mm_dtype):
    """Phase 1: circular Conv1d(k=3, stride=1) + per-block sum / sum-of-squares.

    x_ref:     (bb, L, C)   input block (channels-last)
    w_ref:     (3*C, C)     fused tap weights, rows [k=0 | k=1 | k=2], each (C_in, C_out)
    b_ref:     (1, C)       conv bias
    y_ref:     (bb, L, C)   conv output block (f32)
    stats_ref: (2, C)       row 0 = sum(y), row 1 = sum(y*y) over this block
    """
    # Fold the batch tile into the matmul M dimension: (bb*L, C) @ (C, C) per tap.
    x = x_ref[...].astype(mm_dtype).reshape(bb * L, C)
    w = w_ref[...].astype(mm_dtype)
    t0 = jnp.dot(x, w[:C], preferred_element_type=jnp.float32).reshape(bb, L, C)
    t1 = jnp.dot(x, w[C:2 * C], preferred_element_type=jnp.float32).reshape(bb, L, C)
    t2 = jnp.dot(x, w[2 * C:], preferred_element_type=jnp.float32).reshape(bb, L, C)

    # Circular taps: tap k=0 pairs with x[l-1], tap k=2 with x[l+1], so
    #   y[b, l] = t0[b, (l-1) mod L] + t1[b, l] + t2[b, (l+1) mod L] + bias.
    t0s = jnp.concatenate([t0[:, L - 1:], t0[:, :L - 1]], axis=1)
    t2s = jnp.concatenate([t2[:, 1:], t2[:, :1]], axis=1)
    y = t0s + t1 + t2s + b_ref[...]                       # bias (1, C) broadcasts
    y_ref[...] = y

    # Single-pass per-channel partial statistics while y is still live in registers.
    yf = y.reshape(bb * L, C)
    s = jnp.sum(yf, axis=0, keepdims=True)                # (1, C)
    q = jnp.sum(yf * yf, axis=0, keepdims=True)           # (1, C)
    stats_ref[...] = jnp.concatenate([s, q], axis=0)      # (2, C)


def _norm_pool_kernel(y_ref, scale_ref, shift_ref, o_ref, *, L, Lout, C):
    """Phase 2: folded BatchNorm affine + ELU + MaxPool1d(kernel=3, stride=2, padding=1)."""
    z = y_ref[...] * scale_ref[...] + shift_ref[...]      # (bb, L, C)
    z = jnp.where(z > 0, z, jnp.exp(jnp.minimum(z, 0.0)) - 1.0)   # ELU(alpha=1)

    bb = z.shape[0]
    neg = jnp.full((bb, 1, C), -jnp.inf, dtype=jnp.float32)
    zm1 = jnp.concatenate([neg, z[:, :L - 1]], axis=1)    # z[l-1], -inf pad at l=0
    zp1 = jnp.concatenate([z[:, 1:], neg], axis=1)        # z[l+1], -inf pad at l=L-1
    m = jnp.maximum(jnp.maximum(zm1, z), zp1)             # window max centered at l

    # out[p] = m[2p] for p = 0..Lout-1 — value-level strided slice (no strided Ref load).
    o_ref[...] = m[:, 0:2 * Lout - 1:2].astype(o_ref.dtype)


def _pick_block_b(B, L, target_rows=512):
    """Largest divisor of B whose bb*L matmul M dimension stays near target_rows."""
    bb = max(1, min(B, max(1, target_rows // max(L, 1))))
    while B % bb:
        bb -= 1
    return bb


def conv_layer(x, w_t, bias, gamma, beta, *, eps=1e-5, mm_dtype=jnp.bfloat16,
               block_b=None, vmem_limit_bytes=32 * 1024 * 1024):
    """x: (B, L, C) float32.  Returns (B, Lout, C) with Lout = (L-1)//2 + 1.

    w_t[k, i, o] == torch Conv1d weight[o, i, k]; bias/gamma/beta are (1, C).
    BatchNorm uses training-mode batch statistics (as the PyTorch module in train mode).
    """
    B, L, C = x.shape
    Lout = (L - 1) // 2 + 1
    bb = block_b if block_b is not None else _pick_block_b(B, L)
    assert B % bb == 0, (B, bb)
    nb = B // bb

    w2 = w_t.reshape(3 * C, C).astype(jnp.float32)
    bias2 = bias.reshape(1, C).astype(jnp.float32)

    cparams = pltpu.CompilerParams(
        dimension_semantics=("parallel",),
        vmem_limit_bytes=vmem_limit_bytes,
    )

    # ---------------- Phase 1: conv + per-block stats ----------------
    conv_kernel = functools.partial(_conv_stats_kernel, bb=bb, L=L, C=C, mm_dtype=mm_dtype)
    y, stats = pl.pallas_call(
        conv_kernel,
        out_shape=(jax.ShapeDtypeStruct((B, L, C), jnp.float32),
                   jax.ShapeDtypeStruct((nb, 2, C), jnp.float32)),
        grid=(nb,),
        in_specs=[
            pl.BlockSpec((bb, L, C), lambda g: (g, 0, 0)),
            pl.BlockSpec((3 * C, C), lambda g: (0, 0)),       # constant index -> no re-DMA
            pl.BlockSpec((1, C), lambda g: (0, 0)),
        ],
        out_specs=(
            pl.BlockSpec((bb, L, C), lambda g: (g, 0, 0)),
            pl.BlockSpec((None, 2, C), lambda g: (g, 0, 0)),
        ),
        compiler_params=cparams,
    )(x, w2, bias2)

    # ---- Tiny cross-block reduction + BN-affine folding (per-channel, plain XLA) ----
    tot = jnp.sum(stats, axis=0)                          # (2, C)
    inv_n = 1.0 / float(B * L)
    mu = tot[0] * inv_n
    # Single-pass var = E[y^2] - mu^2 in f32, clamped at 0.
    # TODO(synk): use a shifted/Welford accumulation for very large B*L (cancellation).
    var = jnp.maximum(tot[1] * inv_n - mu * mu, 0.0)
    scale = gamma.reshape(-1) * jax.lax.rsqrt(var + eps)
    shift = beta.reshape(-1) - mu * scale
    scale = scale.reshape(1, C).astype(jnp.float32)
    shift = shift.reshape(1, C).astype(jnp.float32)
    # TODO(synk): running-mean/var buffer updates (BatchNorm1d training side effect)
    # are not modeled.

    # ---------------- Phase 2: normalize + ELU + maxpool ----------------
    pool_kernel = functools.partial(_norm_pool_kernel, L=L, Lout=Lout, C=C)
    out = pl.pallas_call(
        pool_kernel,
        out_shape=jax.ShapeDtypeStruct((B, Lout, C), x.dtype),
        grid=(nb,),
        in_specs=[
            pl.BlockSpec((bb, L, C), lambda g: (g, 0, 0)),
            pl.BlockSpec((1, C), lambda g: (0, 0)),
            pl.BlockSpec((1, C), lambda g: (0, 0)),
        ],
        out_specs=pl.BlockSpec((bb, Lout, C), lambda g: (g, 0, 0)),
        compiler_params=cparams,
    )(y, scale, shift)
    return out


def _reference(x, w_t, bias, gamma, beta):
    """Pure-JAX reference mirroring the PyTorch module (NCL internally, f32 throughout)."""
    B, L, C = x.shape
    xt = jnp.transpose(x, (0, 2, 1))                                    # (B, C, L)
    xpad = jnp.concatenate([xt[:, :, -1:], xt, xt[:, :, :1]], axis=-1)  # circular pad 1
    y = jnp.zeros((B, C, L), jnp.float32)
    for k in range(3):
        y = y + jnp.einsum('bil,io->bol', xpad[:, :, k:k + L], w_t[k])
    y = y + bias.reshape(1, C, 1)
    mu = jnp.mean(y, axis=(0, 2), keepdims=True)
    var = jnp.mean((y - mu) ** 2, axis=(0, 2), keepdims=True)
    y = (y - mu) / jnp.sqrt(var + 1e-5) * gamma.reshape(1, C, 1) + beta.reshape(1, C, 1)
    y = jnp.where(y > 0, y, jnp.exp(y) - 1.0)
    Lout = (L - 1) // 2 + 1
    ypad = jnp.concatenate(
        [jnp.full((B, C, 1), -jnp.inf), y, jnp.full((B, C, 1), -jnp.inf)], axis=-1)
    cols = [jnp.max(ypad[:, :, 2 * p:2 * p + 3], axis=-1) for p in range(Lout)]
    out = jnp.stack(cols, axis=-1)                                       # (B, C, Lout)
    return jnp.transpose(out, (0, 2, 1))                                 # (B, Lout, C)


if __name__ == "__main__":
    B, L, C = 2, 16, 4  # batch, sequence length, channels (c_in)

    key = jax.random.PRNGKey(0)
    k1, k2, k3, k4, k5 = jax.random.split(key, 5)
    x = jax.random.normal(k1, (B, L, C), dtype=jnp.float32)
    # w_t[k, i, o] == torch Conv1d weight[o, i, k]
    w_t = jax.random.normal(k2, (3, C, C), dtype=jnp.float32) * 0.3
    bias = jax.random.normal(k3, (1, C), dtype=jnp.float32) * 0.1
    gamma = 1.0 + 0.2 * jax.random.normal(k4, (1, C), dtype=jnp.float32)  # BN weight
    beta = 0.1 * jax.random.normal(k5, (1, C), dtype=jnp.float32)         # BN bias

    Lout = (L - 1) // 2 + 1
    ref = jax.block_until_ready(_reference(x, w_t, bias, gamma, beta))

    # Tight check with f32 MXU operands (isolates the fused-kernel math).
    out_f32 = jax.block_until_ready(
        conv_layer(x, w_t, bias, gamma, beta, mm_dtype=jnp.float32))
    assert out_f32.shape == (B, Lout, C), out_f32.shape
    assert jnp.allclose(out_f32, ref, atol=1e-3, rtol=1e-3), \
        f"f32 mismatch: max abs err {jnp.max(jnp.abs(out_f32 - ref))}"

    # Production default: bf16 MXU operands, f32 accumulation -> bf16-sized tolerance.
    out = jax.block_until_ready(conv_layer(x, w_t, bias, gamma, beta))
    assert out.shape == (B, Lout, C), out.shape
    assert jnp.allclose(out, ref, atol=2e-2, rtol=2e-2), \
        f"bf16 mismatch: max abs err {jnp.max(jnp.abs(out - ref))}"

    print("KERNEL_OK")
</pallas_src>

<mosaic_0001>
module attributes {stable_mosaic.version = 11 : i64} {
  func.func @_conv_stats_kernel(%arg0: i32, %arg1: memref<2x16x4xf32, #tpu.memory_space<vmem>>, %arg2: memref<12x4xf32, #tpu.memory_space<vmem>>, %arg3: memref<1x4xf32, #tpu.memory_space<vmem>>, %arg4: memref<2x16x4xf32, #tpu.memory_space<vmem>>, %arg5: memref<1x2x4xf32, #tpu.memory_space<vmem>>) attributes {dimension_semantics = [#tpu.dimension_semantics<parallel>], iteration_bounds = array<i64: 1>, scalar_prefetch = 0 : i64, scratch_operands = 0 : i64, tpu.core_type = #tpu.core_type<tc>, window_params = [{transform_indices = @transform_0, window_bounds = array<i64: 2, 16, 4>}, {pipeline_mode = #tpu.pipeline_mode<synchronous>, transform_indices = @transform_1, window_bounds = array<i64: 12, 4>}, {pipeline_mode = #tpu.pipeline_mode<synchronous>, transform_indices = @transform_2, window_bounds = array<i64: 1, 4>}, {transform_indices = @transform_3, window_bounds = array<i64: 2, 16, 4>}, {transform_indices = @transform_4, window_bounds = array<i64: 1, 2, 4>}]} {
    %c0 = arith.constant 0 : index
    %c0_0 = arith.constant 0 : index
    %c0_1 = arith.constant 0 : index
    %0 = vector.load %arg1[%c0, %c0_0, %c0_1] : memref<2x16x4xf32, #tpu.memory_space<vmem>>, vector<2x16x4xf32>
    %1 = vector.shape_cast %0 : vector<2x16x4xf32> to vector<32x4xf32>
    %c0_2 = arith.constant 0 : index
    %c0_3 = arith.constant 0 : index
    %2 = vector.load %arg2[%c0_2, %c0_3] : memref<12x4xf32, #tpu.memory_space<vmem>>, vector<12x4xf32>
    %3 = vector.extract_strided_slice %2 {offsets = [0, 0], sizes = [4, 4], strides = [1, 1]} : vector<12x4xf32> to vector<4x4xf32>
    %cst = arith.constant dense<0.000000e+00> : vector<32x4xf32>
    %4 = tpu.matmul %1, %3, %cst {dimension_numbers = #tpu.dot_dimension_numbers<[1], [0], [0], [1], [0, 0, 1, 1], [], []>} : vector<32x4xf32>, vector<4x4xf32>, vector<32x4xf32> -> vector<32x4xf32>
    %5 = vector.shape_cast %4 : vector<32x4xf32> to vector<2x16x4xf32>
    %6 = vector.extract_strided_slice %2 {offsets = [4, 0], sizes = [4, 4], strides = [1, 1]} : vector<12x4xf32> to vector<4x4xf32>
    %cst_4 = arith.constant dense<0.000000e+00> : vector<32x4xf32>
    %7 = tpu.matmul %1, %6, %cst_4 {dimension_numbers = #tpu.dot_dimension_numbers<[1], [0], [0], [1], [0, 0, 1, 1], [], []>} : vector<32x4xf32>, vector<4x4xf32>, vector<32x4xf32> -> vector<32x4xf32>
    %8 = vector.shape_cast %7 : vector<32x4xf32> to vector<2x16x4xf32>
    %9 = vector.extract_strided_slice %2 {offsets = [8, 0], sizes = [4, 4], strides = [1, 1]} : vector<12x4xf32> to vector<4x4xf32>
    %cst_5 = arith.constant dense<0.000000e+00> : vector<32x4xf32>
    %10 = tpu.matmul %1, %9, %cst_5 {dimension_numbers = #tpu.dot_dimension_numbers<[1], [0], [0], [1], [0, 0, 1, 1], [], []>} : vector<32x4xf32>, vector<4x4xf32>, vector<32x4xf32> -> vector<32x4xf32>
    %11 = vector.shape_cast %10 : vector<32x4xf32> to vector<2x16x4xf32>
    %12 = vector.extract_strided_slice %5 {offsets = [0, 15, 0], sizes = [2, 1, 4], strides = [1, 1, 1]} : vector<2x16x4xf32> to vector<2x1x4xf32>
    %13 = vector.extract_strided_slice %5 {offsets = [0, 0, 0], sizes = [2, 15, 4], strides = [1, 1, 1]} : vector<2x16x4xf32> to vector<2x15x4xf32>
    %14 = tpu.concatenate %12, %13 in 1 : vector<2x1x4xf32>, vector<2x15x4xf32> -> vector<2x16x4xf32>
    %15 = vector.extract_strided_slice %11 {offsets = [0, 1, 0], sizes = [2, 15, 4], strides = [1, 1, 1]} : vector<2x16x4xf32> to vector<2x15x4xf32>
    %16 = vector.extract_strided_slice %11 {offsets = [0, 0, 0], sizes = [2, 1, 4], strides = [1, 1, 1]} : vector<2x16x4xf32> to vector<2x1x4xf32>
    %17 = tpu.concatenate %15, %16 in 1 : vector<2x15x4xf32>, vector<2x1x4xf32> -> vector<2x16x4xf32>
    %18 = arith.addf %14, %8 : vector<2x16x4xf32>
    %19 = arith.addf %18, %17 : vector<2x16x4xf32>
    %c0_6 = arith.constant 0 : index
    %c0_7 = arith.constant 0 : index
    %20 = vector.load %arg3[%c0_6, %c0_7] : memref<1x4xf32, #tpu.memory_space<vmem>>, vector<1x4xf32>
    %21 = vector.shape_cast %20 : vector<1x4xf32> to vector<1x1x4xf32>
    %22 = vector.broadcast %21 : vector<1x1x4xf32> to vector<2x16x4xf32>
    %23 = arith.addf %19, %22 : vector<2x16x4xf32>
    %c0_8 = arith.constant 0 : index
    %c0_9 = arith.constant 0 : index
    %c0_10 = arith.constant 0 : index
    %24 = vector.load %arg4[%c0_8, %c0_9, %c0_10] : memref<2x16x4xf32, #tpu.memory_space<vmem>>, vector<2x16x4xf32>
    tpu.vector_store %arg4[%c0_8, %c0_9, %c0_10], %23 {strides = array<i32>} : memref<2x16x4xf32, #tpu.memory_space<vmem>>, vector<2x16x4xf32>,
    %25 = vector.shape_cast %23 : vector<2x16x4xf32> to vector<32x4xf32>
    %cst_11 = arith.constant dense<0.000000e+00> : vector<4xf32>
    %26 = vector.multi_reduction <add>, %25, %cst_11 [0] : vector<32x4xf32> to vector<4xf32>
    %27 = vector.shape_cast %26 : vector<4xf32> to vector<1x4xf32>
    %28 = arith.mulf %25, %25 : vector<32x4xf32>
    %cst_12 = arith.constant dense<0.000000e+00> : vector<4xf32>
    %29 = vector.multi_reduction <add>, %28, %cst_12 [0] : vector<32x4xf32> to vector<4xf32>
    %30 = vector.shape_cast %29 : vector<4xf32> to vector<1x4xf32>
    %31 = tpu.concatenate %27, %30 in 0 : vector<1x4xf32>, vector<1x4xf32> -> vector<2x4xf32>
    %c0_13 = arith.constant 0 : index
    %c0_14 = arith.constant 0 : index
    %c0_15 = arith.constant 0 : index
    %32 = vector.load %arg5[%c0_13, %c0_14, %c0_15] : memref<1x2x4xf32, #tpu.memory_space<vmem>>, vector<1x2x4xf32>
    %33 = vector.shape_cast %32 : vector<1x2x4xf32> to vector<2x4xf32>
    %34 = vector.shape_cast %31 : vector<2x4xf32> to vector<1x2x4xf32>
    tpu.vector_store %arg5[%c0_13, %c0_14, %c0_15], %34 {strides = array<i32>} : memref<1x2x4xf32, #tpu.memory_space<vmem>>, vector<1x2x4xf32>,
    return
  }
  func.func @transform_0(%arg0: i32) -> (i32, i32, i32) {
    %c0_i32 = arith.constant 0 : i32
    %c0_i32_0 = arith.constant 0 : i32
    %c0_i32_1 = arith.constant 0 : i32
    return %arg0, %c0_i32, %c0_i32_0 : i32, i32, i32
  }
  func.func @transform_1(%arg0: i32) -> (i32, i32) {
    %c0_i32 = arith.constant 0 : i32
    %c0_i32_0 = arith.constant 0 : i32
    %c0_i32_1 = arith.constant 0 : i32
    return %c0_i32, %c0_i32_0 : i32, i32
  }
  func.func @transform_2(%arg0: i32) -> (i32, i32) {
    %c0_i32 = arith.constant 0 : i32
    %c0_i32_0 = arith.constant 0 : i32
    %c0_i32_1 = arith.constant 0 : i32
    return %c0_i32, %c0_i32_0 : i32, i32
  }
  func.func @transform_3(%arg0: i32) -> (i32, i32, i32) {
    %c0_i32 = arith.constant 0 : i32
    %c0_i32_0 = arith.constant 0 : i32
    %c0_i32_1 = arith.constant 0 : i32
    return %arg0, %c0_i32, %c0_i32_0 : i32, i32, i32
  }
  func.func @transform_4(%arg0: i32) -> (i32, i32, i32) {
    %c0_i32 = arith.constant 0 : i32
    %c0_i32_0 = arith.constant 0 : i32
    %c0_i32_1 = arith.constant 0 : i32
    return %arg0, %c0_i32, %c0_i32_0 : i32, i32, i32
  }
}

</mosaic_0001>

<bundles_post_ra>
// kernel: tpu_custom_call.1
= control target key start
LH: loop header
LB: loop body
LE: loop exit
PB: predicated region body
PF: predicated region fallthrough
CT: control target
= control target key end

     0   :  { %vm36_vm0 = vcmask 1043456   ;;  %vm23_vm1 = vcmask 31744   ;;  %s607_s0 = inlined_call_operand.vmem [shape: f32[2,16,4], index: 0, kind: input, shape index: {}]   ;;  %s608_s1 = inlined_call_operand.vmem [shape: f32[12,4], index: 1, kind: input, shape index: {}]   ;;  %s609_s2 = inlined_call_operand.vmem [shape: f32[1,4], index: 2, kind: input, shape index: {}]   ;;  %s610_s3 = inlined_call_operand.vmem [shape: f32[2,16,4], index: 3, kind: output, shape index: {0}]   ;;  %s611_s4 = inlined_call_operand.hbm [shape: f32[1,2,4], index: 4, kind: output, shape index: {1}]  }
   0x1   :  { %v21_v0 = vld [vmem:[%s608_s1] sm:$0xff]  ;;  %v19_v2 = vld [vmem:[%s607_s0 + $0x10] sm:$0xff]  ;;  %v18_v3 = vld [vmem:[%s607_s0 + $0x8] sm:$0xff] }
   0x2   :  { %v17_v1 = vld [vmem:[%s607_s0] sm:$0xff]  ;;  %444 = vmatprep.subr.msk.mxu0 %vm36_vm0, %v21_v0  ;;  %468 = vmatprep.subr.msk.mxu1 %vm36_vm0, %v21_v0  ;;  %v20_v4 = vld [vmem:[%s607_s0 + $0x18] sm:$0xff]  ;;  %v125_v5 = vrot.slane %v21_v0, 4  ;;  %v22_v6 = vld [vmem:[%s608_s1 + $0x8] sm:$0xf] }
   0x3   :  { %445 = vmatpush3.msk.msra.mxu0 %vm36_vm0, %v21_v0  ;;  %469 = vmatpush3.msk.msra.mxu1 %vm36_vm0, %v21_v0 }
   0x4   :  { %10 = vsyncpa [#allocation3], 0  ;;  %446 = vmatprep.mubr.msk.f32.mxu0 %vm23_vm1, %v17_v1  ;;  %449 = vmatprep.mubr.msk.f32.mxu1 %vm23_vm1, %v19_v2  ;;  %vm309_vm2 = vcmask 1040384   ;;  %vm324_vm3 = vcmask 1046528   ;;  %v428_v29 = vld [vmem:[%s609_s2] ss:$0 sm:$0xff] }
   0x5   :  { %447 = vmatmul.mubr.msk.f32.vlgmr.msra.gmra.mrb[0].mxu0 %vm23_vm1, %v18_v3  ;;  %450 = vmatmul.mubr.msk.f32.vlgmr.msra.gmra.mrb[0].mxu1 %vm23_vm1, %v20_v4  ;;  %vm393_vm4 = vcmask 25600  }
   0x6   :  { %460 = vmatprep.subr.msk.mxu0 %vm36_vm0, %v22_v6  ;;  %452 = vmatprep.subr.msk.mxu1 %vm36_vm0, %v125_v5 }
   0x7   :  { %461 = vmatpush3.msk.msra.mxu0 %vm36_vm0, %v22_v6  ;;  %453 = vmatpush3.msk.msra.mxu1 %vm36_vm0, %v125_v5 }
   0x8   :  { %454 = vmatprep.mubr.msk.f32.mxu1 %vm23_vm1, %v17_v1  ;;  %462 = vmatprep.mubr.msk.f32.mxu0 %vm23_vm1, %v17_v1 }
   0x9   :  { %455 = vmatmul.mubr.msk.f32.vlgmr.msra.gmra.mrb[2].mxu1 %vm23_vm1, %v18_v3  ;;  %463 = vmatmul.mubr.msk.f32.vlgmr.msra.gmra.mrb[2].mxu0 %vm23_vm1, %v18_v3 }
   0xa   :  { %457 = vmatprep.mubr.msk.f32.mxu1 %vm23_vm1, %v19_v2  ;;  %465 = vmatprep.mubr.msk.f32.mxu0 %vm23_vm1, %v19_v2 }
   0xd   :  { %458 = vmatmul.mubr.msk.f32.gmra.mrb[4].mxu1 %vm23_vm1, %v20_v4  ;;  %466 = vmatmul.mubr.msk.f32.gmra.mrb[4].mxu0 %vm23_vm1, %v20_v4 }
  0xd8   :  { %v448_v7 = vpop.f32.mrb[0].mxu0  ;;  %v451_v8 = vpop.f32.mrb[0].mxu1 }
  0xd9   :  { %v303_v9 = vrot.slane %v448_v7, 7  ;;  %v106_v10 = vpop.f32.mrb[1].mxu0  ;;  %v304_v11 = vrot.slane %v451_v8, 7  ;;  %v116_v12 = vpop.f32.mrb[1].mxu1 }
  0xda   :  { %v310_v13 = vrot.slane %v106_v10, 7  ;;  %v312_v14 = vrot.slane %v116_v12, 7 }
  0xdc   :  { %v456_v15 = vpop.f32.mrb[2].mxu1  ;;  %v311_v16 = vsel %vm309_vm2, %v310_v13, %v303_v9  ;;  %v464_v17 = vpop.f32.mrb[2].mxu0  ;;  %v318_v18 = vsel %vm309_vm2, %v303_v9, %v310_v13  ;;  %v313_v19 = vsel %vm309_vm2, %v312_v14, %v304_v11  ;;  %v319_v20 = vsel %vm309_vm2, %v304_v11, %v312_v14 }
  0xdd   :  { %v340_v21 = vadd.f32 %v456_v15, %v311_v16  ;;  %v326_v22 = vrot.slane %v464_v17, 1  ;;  %v194_v23 = vpop.f32.mrb[3].mxu1  ;;  %v282_v24 = vpop.f32.mrb[3].mxu0 }
  0xde   :  { %v339_v25 = vadd.f32 %v318_v18, %v194_v23  ;;  %v325_v26 = vrot.slane %v282_v24, 1 }
  0xe0   :  { %v327_v27 = vsel %vm324_vm3, %v325_v26, %v326_v22  ;;  %v337_v28 = vsel %vm324_vm3, %v326_v22, %v325_v26  ;;  %v459_v30 = vpop.f32.mrb[4].mxu1  ;;  %v467_v31 = vpop.f32.mrb[4].mxu0 }
  0xe1   :  { %v343_v32 = vadd.f32 %v339_v25, %v327_v27  ;;  %v344_v33 = vadd.f32 %v340_v21, %v337_v28  ;;  %v342_v34 = vadd.f32 %v459_v30, %v313_v19  ;;  %v329_v35 = vrot.slane %v467_v31, 1  ;;  %v204_v36 = vpop.f32.mrb[5].mxu1  ;;  %v292_v37 = vpop.f32.mrb[5].mxu0 }
  0xe2   :  { %v341_v38 = vadd.f32 %v319_v20, %v204_v36  ;;  %v328_v39 = vrot.slane %v292_v37, 1 }
  0xe3   :  { %v354_v40 = vadd.f32 %v428_v29, %v343_v32  ;;  %v355_v41 = vadd.f32 %v428_v29, %v344_v33 }
  0xe4   :  { %v330_v42 = vsel %vm324_vm3, %v328_v39, %v329_v35  ;;  %v338_v43 = vsel %vm324_vm3, %v329_v35, %v328_v39 }
  0xe5   :  { %358 = vst.msk [vmem:[%s610_s3] sm:$0xff] %vm23_vm1, %v354_v40  ;;  %359 = vst.msk [vmem:[%s610_s3 + $0x8] sm:$0xff] %vm23_vm1, %v355_v41  ;;  %v362_v44 = vsel %vm23_vm1, %v354_v40, 0.0  ;;  %v363_v45 = vsel %vm23_vm1, %v355_v41, 0.0  ;;  %v375_v46 = vmul.f32 %v354_v40, %v354_v40  ;;  %v376_v47 = vmul.f32 %v355_v41, %v355_v41 }
  0xe6   :  { %v364_v48 = vadd.f32 %v363_v45, %v362_v44  ;;  %v345_v49 = vadd.f32 %v341_v38, %v330_v42  ;;  %v346_v50 = vadd.f32 %v342_v34, %v338_v43 }
  0xe7   :  { %v379_v51 = vsel %vm23_vm1, %v375_v46, 0.0  ;;  %v380_v52 = vsel %vm23_vm1, %v376_v47, 0.0 }
  0xe8   :  { %v381_v53 = vadd.f32 %v380_v52, %v379_v51  ;;  %v356_v54 = vadd.f32 %v428_v29, %v345_v49  ;;  %v357_v55 = vadd.f32 %v428_v29, %v346_v50 }
  0xea   :  { %360 = vst.msk [vmem:[%s610_s3 + $0x10] sm:$0xff] %vm23_vm1, %v356_v54  ;;  %361 = vst.msk [vmem:[%s610_s3 + $0x18] sm:$0xff] %vm23_vm1, %v357_v55  ;;  %v365_v56 = vsel %vm23_vm1, %v356_v54, 0.0  ;;  %v377_v57 = vmul.f32 %v356_v54, %v356_v54  ;;  %v378_v58 = vmul.f32 %v357_v55, %v357_v55  ;;  %v367_v60 = vsel %vm23_vm1, %v357_v55, 0.0  ;;  %s495_s3 = smov [#allocation2]  }
  0xeb   :  { %v366_v59 = vadd.f32 %v365_v56, %v364_v48  ;;  %s403_s8 = sshll.u32 %s495_s3, 4  ;;  %s404_s8 = int_to_ptr.vmem [resolvable:$true] %s403_s8 }
  0xec   :  { %v382_v61 = vsel %vm23_vm1, %v377_v57, 0.0  ;;  %v384_v0 = vsel %vm23_vm1, %v378_v58, 0.0  ;;  %s471_s9 = scalar_lea.vmem %s404_s8, 32  ;;  %p476_p1 = scmp.lt.s32.totalorder %s404_s8, %s404_s8 }
  0xed   :  { %v368_v62 = vadd.f32 %v367_v60, %v366_v59  ;;  %v383_v63 = vadd.f32 %v382_v61, %v381_v53  ;;  %p472_p0 = scmp.ne.s32.totalorder %s404_s8, %s471_s9  ;;  %p477_p2 = scmp.lt.s32.totalorder %s471_s9, %s471_s9 }
  0xef   :  { %v369_v1 = vrot.slane %v368_v62, 4  ;;  %v385_v2 = vadd.f32 %v384_v0, %v383_v63  ;;  %p478_p3 = por %p477_p2, %p476_p1 }
  0xf1   :  { %v370_v3 = vadd.f32 %v369_v1, %v368_v62  ;;  %v386_v4 = vrot.slane %v385_v2, 4  ;;  %p479_p4 = pnand %p478_p3, %p472_p0 }
  0xf3   :  { %v371_v5 = vrot.slane %v370_v3, 2  ;;  %v387_v6 = vadd.f32 %v386_v4, %v385_v2 }
  0xf5   :  { %v372_v7 = vadd.f32 %v371_v5, %v370_v3  ;;  %v388_v8 = vrot.slane %v387_v6, 2 }
  0xf7   :  { %v373_v9 = vrot.slane %v372_v7, 1  ;;  %v389_v10 = vadd.f32 %v388_v8, %v387_v6 }
  0xf9   :  { %v390_v11 = vrot.slane %v389_v10, 1  ;;  %v374_v12 = vadd.f32 %v373_v9, %v372_v7 }
  0xfb   :  { %v391_v13 = vadd.f32 %v390_v11, %v389_v10 }
  0xfd   :  { %v392_v14 = vsel %vm309_vm2, %v374_v12, %v391_v13 }
  0xfe   :  { %394 = vst.msk [vmem:[#allocation2] sm:$0x3] %vm393_vm4, %v392_v14 }
  0xff   :  { %482 = shalt.err (!%p479_p4)
}
 0x100   :  { %s483_s12 = scalar_lea.hbm %s611_s4, 32 }
 0x101   :  { %p484_p5 = scmp.ne.s32.totalorder %s611_s4, %s483_s12  ;;  %p487_p6 = scmp.lt.u32.totalorder %s483_s12, %s611_s4 }
 0x103   :  { %p489_p7 = pnand %p487_p6, %p484_p5 }
 0x105   :  { %492 = shalt.err (!%p489_p7)
}
 0x106   :  { %406 = dma.vmem_to_hbm [thread:$0]  %s404_s8, 32, %s611_s4, [#allocation3]  }
 0x107   :  { %493 = dma.done.wait [#allocation3], 32  }
 0x108   :  { %494 = vsyncadd [#allocation3], 4294967264 }
 0x109   :  { %412 = vsyncpa [#allocation3], 1 }

</bundles_post_ra>
